<compile_context>
chip_gen: v6e
topology: v6e:2x2x1
jax: 0.10.0
libtpu: 0.0.40
codegen_flags: <defaults>
</compile_context>

<pallas_src>
import functools

import jax
import jax.numpy as jnp
import numpy as np
from jax.experimental import pallas as pl
from jax.experimental.pallas import tpu as pltpu

_MIB = 1024 * 1024


def _round_up(x, m):
    return ((x + m - 1) // m) * m


def _device_kind():
    try:
        return jax.devices()[0].device_kind.lower()
    except Exception:
        return ""


def _vmem_capacity_bytes():
    """Physical VMEM per TensorCore; falls back to a device-kind heuristic."""
    try:
        return int(pltpu.get_tpu_info().vmem_capacity_bytes)
    except Exception:
        pass
    kind = _device_kind()
    if not kind:
        return 64 * _MIB                       # conservative default
    # v7x: 64 MiB per TC; v5e / v6e: 128 MiB.
    return 64 * _MIB if "7" in kind else 128 * _MIB


def _bf16_elementwise():
    """v6e/v7x VPUs have native bf16 ALUs; keep f32 elementwise on v5e/older."""
    kind = _device_kind()
    return ("v6" in kind) or ("v7" in kind) or ("tpu7" in kind)


def _resident_spec(shape):
    """Constant (weights/bias/mask) block: same block every step -> resident.
    Request single buffering; fall back gracefully on older jax."""
    index_map = lambda i: (0, 0)
    try:
        return pl.BlockSpec(shape, index_map, pipeline_mode=pl.Buffered(1))
    except Exception:
        return pl.BlockSpec(shape, index_map)


def _decoder_kernel(y_ref, cmask_ref, w1_ref, b1_ref, w2_ref, b2_ref,
                    w3_ref, b3_ref, w4_ref, b4_ref, o_ref):
    """Fused gather + 4-layer MLP + scatter/pass-through for one batch tile.

    y_ref:   (TILE_B, P_pad)   input dtype (f32 or bf16)
    cmask:   (1, P_pad)        f32, 1.0 at control columns, 0.0 elsewhere
    w*_ref:  bf16 weights (gather/scatter pre-folded into w1/w4)
    b1..b3:  bf16 on v6e/v7x, f32 on v5e (sets the elementwise dtype)
    b4:      f32 (final bias add + pass-through stay in f32 -> exact control cols)
    o_ref:   (TILE_B, N_pad)   same dtype as y
    """
    y = y_ref[...]
    yf = y.astype(jnp.float32)
    b1 = b1_ref[...]
    b2 = b2_ref[...]
    b3 = b3_ref[...]
    act_dt = b1.dtype  # bf16 on v6e/v7x, f32 on v5e

    h = jnp.dot(y.astype(jnp.bfloat16), w1_ref[...],
                preferred_element_type=jnp.float32)
    h = jnp.maximum(h.astype(act_dt) + b1, 0.0)
    h = jnp.dot(h.astype(jnp.bfloat16), w2_ref[...],
                preferred_element_type=jnp.float32)
    h = jnp.maximum(h.astype(act_dt) + b2, 0.0)
    h = jnp.dot(h.astype(jnp.bfloat16), w3_ref[...],
                preferred_element_type=jnp.float32)
    h = jnp.maximum(h.astype(act_dt) + b3, 0.0)
    x = jnp.dot(h.astype(jnp.bfloat16), w4_ref[...],
                preferred_element_type=jnp.float32) + b4_ref[...]

    # Control columns: W4_eff/b4_eff are exactly zero there, so adding the
    # masked input reproduces x[:, control] = y[:, control] exactly (f32 path).
    o_ref[...] = (x + yf * cmask_ref[...]).astype(o_ref.dtype)


def _fused_decoder_pallas(y_in, fused, tile_b, vmem_limit_bytes):
    cmask, w1, b1, w2, b2, w3, b3, w4, b4 = fused
    batch_pad, p_pad = y_in.shape
    h_pad = w1.shape[1]
    n_pad = w4.shape[1]
    grid = (batch_pad // tile_b,)

    flops = 2 * batch_pad * (p_pad * h_pad + 2 * h_pad * h_pad + h_pad * n_pad)
    const_bytes = sum(int(a.size) * a.dtype.itemsize for a in fused)
    bytes_accessed = (batch_pad * p_pad * y_in.dtype.itemsize      # y in
                      + batch_pad * n_pad * y_in.dtype.itemsize    # x out
                      + const_bytes)                               # weights/biases

    in_specs = [
        pl.BlockSpec((tile_b, p_pad), lambda i: (i, 0)),   # streamed y tile
        _resident_spec((1, p_pad)),                        # control mask
        _resident_spec((p_pad, h_pad)), _resident_spec((1, h_pad)),  # W1_eff, b1
        _resident_spec((h_pad, h_pad)), _resident_spec((1, h_pad)),  # W2, b2
        _resident_spec((h_pad, h_pad)), _resident_spec((1, h_pad)),  # W3, b3
        _resident_spec((h_pad, n_pad)), _resident_spec((1, n_pad)),  # W4_eff, b4_eff
    ]

    return pl.pallas_call(
        _decoder_kernel,
        out_shape=jax.ShapeDtypeStruct((batch_pad, n_pad), y_in.dtype),
        grid=grid,
        in_specs=in_specs,
        out_specs=pl.BlockSpec((tile_b, n_pad), lambda i: (i, 0)),
        compiler_params=pltpu.CompilerParams(
            dimension_semantics=("parallel",),
            vmem_limit_bytes=int(vmem_limit_bytes)),
        cost_estimate=pl.CostEstimate(
            flops=int(flops), transcendentals=0,
            bytes_accessed=int(bytes_accessed)),
    )(y_in, cmask, w1, b1, w2, b2, w3, b3, w4, b4)


def _choose_tile_b(batch, p_pad, h_pad, n_pad, const_bytes, io_itemsize,
                   vmem_bytes):
    """Batch-tile rows sized from the real VMEM budget (not a flat cap)."""
    budget = (vmem_bytes * 3) // 4              # ~48 MiB v7x, ~96 MiB v5e/v6e
    avail = budget - const_bytes                # constants resident, single-buffered
    # Per-row bytes: double-buffered y + out tiles, plus live f32 activations.
    per_row = (2 * p_pad + 2 * n_pad) * io_itemsize + (2 * h_pad + n_pad) * 4
    t = avail // max(per_row, 1)
    t = int(t) - int(t) % 8                     # sublane multiple
    # Cap at 256: full M-pass for the 256-wide MXU, >=2 grid steps whenever
    # batch > 256 so v7x's second TensorCore gets work; smaller steps also
    # help the pipeliner hide DMA on v5e's lower HBM bandwidth.
    t = min(t, 256)
    t = min(t, _round_up(batch, 8))
    return max(t, 8)


def prepare_decoder_params(params, control_idx, non_control_idx, *,
                           nxny, P, hidden_dim):
    """Fold gather/scatter into W1/W4, zero-pad to lane-dense 128 multiples,
    cast weights to bf16 (biases to the per-chip elementwise dtype)."""
    assert P == nxny, "Decoder semantics require P == nxny"
    w1, b1, w2, b2, w3, b3, w4, b4 = [np.asarray(p, np.float32) for p in params]
    ci = np.asarray(control_idx, np.int64)
    nci = np.asarray(non_control_idx, np.int64)

    p_pad = _round_up(P, 128)
    h_pad = _round_up(hidden_dim, 128)
    n_pad = p_pad  # output padded to same lane width as input (P == nxny)

    # Fold column gather into W1:  (y @ S_in) @ W1 == y @ (S_in @ W1)
    w1_eff = np.zeros((P, hidden_dim), np.float32)
    w1_eff[nci, :] = w1
    # Fold column scatter into W4/b4:  (h @ W4 + b4) @ S_out
    w4_eff = np.zeros((hidden_dim, nxny), np.float32)
    w4_eff[:, nci] = w4
    b4_eff = np.zeros((1, nxny), np.float32)
    b4_eff[0, nci] = b4.reshape(-1)

    def pad2(a, rows, cols):
        out = np.zeros((rows, cols), np.float32)
        out[:a.shape[0], :a.shape[1]] = a
        return out

    cmask = np.zeros((1, p_pad), np.float32)
    cmask[0, ci] = 1.0

    bf16 = jnp.bfloat16
    act_dt = bf16 if _bf16_elementwise() else jnp.float32
    return (
        jnp.asarray(cmask),                                            # f32
        jnp.asarray(pad2(w1_eff, p_pad, h_pad), dtype=bf16),
        jnp.asarray(pad2(b1.reshape(1, -1), 1, h_pad), dtype=act_dt),
        jnp.asarray(pad2(w2, h_pad, h_pad), dtype=bf16),
        jnp.asarray(pad2(b2.reshape(1, -1), 1, h_pad), dtype=act_dt),
        jnp.asarray(pad2(w3, h_pad, h_pad), dtype=bf16),
        jnp.asarray(pad2(b3.reshape(1, -1), 1, h_pad), dtype=act_dt),
        jnp.asarray(pad2(w4_eff, h_pad, n_pad), dtype=bf16),
        jnp.asarray(pad2(b4_eff, 1, n_pad)),                           # f32
    )


@functools.partial(jax.jit, static_argnames=("nxny",))
def decoder_forward(y, fused_params, *, nxny):
    """Full Decoder.forward.  y: (batch, P) with P == nxny."""
    batch, P = y.shape
    assert P == nxny, "Decoder semantics require P == nxny"
    p_pad = fused_params[0].shape[1]
    h_pad = fused_params[1].shape[1]
    n_pad = fused_params[7].shape[1]
    const_bytes = sum(int(a.size) * a.dtype.itemsize for a in fused_params)

    vmem_bytes = _vmem_capacity_bytes()
    tile_b = _choose_tile_b(batch, p_pad, h_pad, n_pad, const_bytes,
                            y.dtype.itemsize, vmem_bytes)
    batch_pad = _round_up(batch, tile_b)
    vmem_limit = (vmem_bytes * 7) // 8

    # Fast path: skip the wrapper-side pad (an extra HBM round trip) when the
    # caller's shapes already match the padded layout.
    if batch_pad == batch and p_pad == P:
        y_in = y
    else:
        y_in = jnp.pad(y, ((0, batch_pad - batch), (0, p_pad - P)))

    x_full = _fused_decoder_pallas(y_in, fused_params, tile_b, vmem_limit)

    if batch_pad == batch and n_pad == nxny:
        return x_full
    return x_full[:batch, :nxny]


def init_decoder_params(key, in_dim, hidden_dim, out_dim):
    """Deterministic synthetic init; weights stored as (in_features, out_features)."""
    dims = [(in_dim, hidden_dim), (hidden_dim, hidden_dim),
            (hidden_dim, hidden_dim), (hidden_dim, out_dim)]
    params = []
    for (fan_in, fan_out) in dims:
        key, kw, kb = jax.random.split(key, 3)
        bound = 1.0 / np.sqrt(fan_in)
        w = jax.random.uniform(kw, (fan_in, fan_out), jnp.float32, -bound, bound)
        b = jax.random.uniform(kb, (1, fan_out), jnp.float32, -bound, bound)
        params += [w, b]
    return tuple(params)


def reference_forward(y, params, control_idx, non_control_idx, nxny, *, bf16_act):
    """Pure-JAX reference mirroring the torch module with the same precision
    path as the kernel (bf16 weights / f32 accumulation; bias+ReLU in bf16 on
    v6e/v7x, f32 on v5e)."""
    w1, b1, w2, b2, w3, b3, w4, b4 = params
    act = jnp.bfloat16 if bf16_act else jnp.float32

    def mm(a, w):
        return jnp.dot(a.astype(jnp.bfloat16).astype(jnp.float32),
                       w.astype(jnp.bfloat16).astype(jnp.float32),
                       preferred_element_type=jnp.float32)

    h = y[:, non_control_idx].astype(jnp.float32)
    for (w, b) in ((w1, b1), (w2, b2), (w3, b3)):
        h = mm(h, w)
        h = jnp.maximum(h.astype(act) + b.astype(act), 0.0).astype(jnp.float32)
    x_nc = mm(h, w4) + b4

    x = jnp.zeros((y.shape[0], nxny), y.dtype)
    x = x.at[:, control_idx].set(y[:, control_idx])
    x = x.at[:, non_control_idx].set(x_nc.astype(y.dtype))
    return x


if __name__ == "__main__":
    # Small shapes consistent with the module: nxny == P, M control indices.
    batch = 4
    nxny = 64        # == P
    P = nxny
    M = 16
    hidden_dim = 32

    # Deterministic control indices (every 4th grid point).
    control_idx_np = np.arange(0, nxny, nxny // M)[:M].astype(np.int32)
    mask = np.ones(nxny, dtype=bool)
    mask[control_idx_np] = False
    non_control_idx_np = np.nonzero(mask)[0].astype(np.int32)

    control_idx = jnp.asarray(control_idx_np)
    non_control_idx = jnp.asarray(non_control_idx_np)

    key = jax.random.PRNGKey(0)
    key, ky = jax.random.split(key)
    y = jax.random.normal(ky, (batch, P), dtype=jnp.float32)

    params = init_decoder_params(key, P - M, hidden_dim, nxny - M)
    fused_params = prepare_decoder_params(
        params, control_idx_np, non_control_idx_np,
        nxny=nxny, P=P, hidden_dim=hidden_dim)

    x = decoder_forward(y, fused_params, nxny=nxny)
    x = jax.block_until_ready(x)

    # Correctness checks.
    assert x.shape == (batch, nxny)
    assert x.dtype == y.dtype
    # Control columns pass through exactly.
    assert bool(jnp.allclose(x[:, control_idx], y[:, control_idx]))
    # Full output matches the pure-JAX reference (same precision path).
    bf16_act = bool(fused_params[2].dtype == jnp.bfloat16)
    x_ref = reference_forward(y, params, control_idx, non_control_idx, nxny,
                              bf16_act=bf16_act)
    assert bool(jnp.allclose(x, x_ref, rtol=1e-3, atol=1e-3))

    print("KERNEL_OK")
</pallas_src>

<mosaic_0001>
module attributes {stable_mosaic.version = 11 : i64} {
  func.func @_decoder_kernel(%arg0: i32, %arg1: memref<8x128xf32, #tpu.memory_space<vmem>>, %arg2: memref<1x128xf32, #tpu.memory_space<vmem>>, %arg3: memref<128x128xbf16, #tpu.memory_space<vmem>>, %arg4: memref<1x128xf32, #tpu.memory_space<vmem>>, %arg5: memref<128x128xbf16, #tpu.memory_space<vmem>>, %arg6: memref<1x128xf32, #tpu.memory_space<vmem>>, %arg7: memref<128x128xbf16, #tpu.memory_space<vmem>>, %arg8: memref<1x128xf32, #tpu.memory_space<vmem>>, %arg9: memref<128x128xbf16, #tpu.memory_space<vmem>>, %arg10: memref<1x128xf32, #tpu.memory_space<vmem>>, %arg11: memref<8x128xf32, #tpu.memory_space<vmem>>) attributes {dimension_semantics = [#tpu.dimension_semantics<parallel>], iteration_bounds = array<i64: 1>, scalar_prefetch = 0 : i64, scratch_operands = 0 : i64, tpu.core_type = #tpu.core_type<tc>, window_params = [{transform_indices = @transform_0, window_bounds = array<i64: 8, 128>}, {pipeline_mode = #tpu.pipeline_mode<synchronous>, transform_indices = @transform_1, window_bounds = array<i64: 1, 128>}, {pipeline_mode = #tpu.pipeline_mode<synchronous>, transform_indices = @transform_2, window_bounds = array<i64: 128, 128>}, {pipeline_mode = #tpu.pipeline_mode<synchronous>, transform_indices = @transform_3, window_bounds = array<i64: 1, 128>}, {pipeline_mode = #tpu.pipeline_mode<synchronous>, transform_indices = @transform_4, window_bounds = array<i64: 128, 128>}, {pipeline_mode = #tpu.pipeline_mode<synchronous>, transform_indices = @transform_5, window_bounds = array<i64: 1, 128>}, {pipeline_mode = #tpu.pipeline_mode<synchronous>, transform_indices = @transform_6, window_bounds = array<i64: 128, 128>}, {pipeline_mode = #tpu.pipeline_mode<synchronous>, transform_indices = @transform_7, window_bounds = array<i64: 1, 128>}, {pipeline_mode = #tpu.pipeline_mode<synchronous>, transform_indices = @transform_8, window_bounds = array<i64: 128, 128>}, {pipeline_mode = #tpu.pipeline_mode<synchronous>, transform_indices = @transform_9, window_bounds = array<i64: 1, 128>}, {transform_indices = @transform_10, window_bounds = array<i64: 8, 128>}]} {
    %c0 = arith.constant 0 : index
    %c0_0 = arith.constant 0 : index
    %0 = vector.load %arg1[%c0, %c0_0] : memref<8x128xf32, #tpu.memory_space<vmem>>, vector<8x128xf32>
    %c0_1 = arith.constant 0 : index
    %c0_2 = arith.constant 0 : index
    %1 = vector.load %arg4[%c0_1, %c0_2] : memref<1x128xf32, #tpu.memory_space<vmem>>, vector<1x128xf32>
    %c0_3 = arith.constant 0 : index
    %c0_4 = arith.constant 0 : index
    %2 = vector.load %arg6[%c0_3, %c0_4] : memref<1x128xf32, #tpu.memory_space<vmem>>, vector<1x128xf32>
    %c0_5 = arith.constant 0 : index
    %c0_6 = arith.constant 0 : index
    %3 = vector.load %arg8[%c0_5, %c0_6] : memref<1x128xf32, #tpu.memory_space<vmem>>, vector<1x128xf32>
    %4 = arith.truncf %0 : vector<8x128xf32> to vector<8x128xbf16>
    %c0_7 = arith.constant 0 : index
    %c0_8 = arith.constant 0 : index
    %5 = vector.load %arg3[%c0_7, %c0_8] : memref<128x128xbf16, #tpu.memory_space<vmem>>, vector<128x128xbf16>
    %cst = arith.constant dense<0.000000e+00> : vector<8x128xf32>
    %6 = tpu.matmul %4, %5, %cst {dimension_numbers = #tpu.dot_dimension_numbers<[1], [0], [0], [1], [0, 0, 1, 1], [], []>} : vector<8x128xbf16>, vector<128x128xbf16>, vector<8x128xf32> -> vector<8x128xf32>
    %7 = vector.broadcast %1 : vector<1x128xf32> to vector<8x128xf32>
    %8 = arith.addf %6, %7 : vector<8x128xf32>
    %cst_9 = arith.constant 0.000000e+00 : f32
    %9 = vector.broadcast %cst_9 : f32 to vector<8x128xf32>
    %10 = arith.maximumf %8, %9 : vector<8x128xf32>
    %11 = arith.truncf %10 : vector<8x128xf32> to vector<8x128xbf16>
    %c0_10 = arith.constant 0 : index
    %c0_11 = arith.constant 0 : index
    %12 = vector.load %arg5[%c0_10, %c0_11] : memref<128x128xbf16, #tpu.memory_space<vmem>>, vector<128x128xbf16>
    %cst_12 = arith.constant dense<0.000000e+00> : vector<8x128xf32>
    %13 = tpu.matmul %11, %12, %cst_12 {dimension_numbers = #tpu.dot_dimension_numbers<[1], [0], [0], [1], [0, 0, 1, 1], [], []>} : vector<8x128xbf16>, vector<128x128xbf16>, vector<8x128xf32> -> vector<8x128xf32>
    %14 = vector.broadcast %2 : vector<1x128xf32> to vector<8x128xf32>
    %15 = arith.addf %13, %14 : vector<8x128xf32>
    %cst_13 = arith.constant 0.000000e+00 : f32
    %16 = vector.broadcast %cst_13 : f32 to vector<8x128xf32>
    %17 = arith.maximumf %15, %16 : vector<8x128xf32>
    %18 = arith.truncf %17 : vector<8x128xf32> to vector<8x128xbf16>
    %c0_14 = arith.constant 0 : index
    %c0_15 = arith.constant 0 : index
    %19 = vector.load %arg7[%c0_14, %c0_15] : memref<128x128xbf16, #tpu.memory_space<vmem>>, vector<128x128xbf16>
    %cst_16 = arith.constant dense<0.000000e+00> : vector<8x128xf32>
    %20 = tpu.matmul %18, %19, %cst_16 {dimension_numbers = #tpu.dot_dimension_numbers<[1], [0], [0], [1], [0, 0, 1, 1], [], []>} : vector<8x128xbf16>, vector<128x128xbf16>, vector<8x128xf32> -> vector<8x128xf32>
    %21 = vector.broadcast %3 : vector<1x128xf32> to vector<8x128xf32>
    %22 = arith.addf %20, %21 : vector<8x128xf32>
    %cst_17 = arith.constant 0.000000e+00 : f32
    %23 = vector.broadcast %cst_17 : f32 to vector<8x128xf32>
    %24 = arith.maximumf %22, %23 : vector<8x128xf32>
    %25 = arith.truncf %24 : vector<8x128xf32> to vector<8x128xbf16>
    %c0_18 = arith.constant 0 : index
    %c0_19 = arith.constant 0 : index
    %26 = vector.load %arg9[%c0_18, %c0_19] : memref<128x128xbf16, #tpu.memory_space<vmem>>, vector<128x128xbf16>
    %cst_20 = arith.constant dense<0.000000e+00> : vector<8x128xf32>
    %27 = tpu.matmul %25, %26, %cst_20 {dimension_numbers = #tpu.dot_dimension_numbers<[1], [0], [0], [1], [0, 0, 1, 1], [], []>} : vector<8x128xbf16>, vector<128x128xbf16>, vector<8x128xf32> -> vector<8x128xf32>
    %c0_21 = arith.constant 0 : index
    %c0_22 = arith.constant 0 : index
    %28 = vector.load %arg10[%c0_21, %c0_22] : memref<1x128xf32, #tpu.memory_space<vmem>>, vector<1x128xf32>
    %29 = vector.broadcast %28 : vector<1x128xf32> to vector<8x128xf32>
    %30 = arith.addf %27, %29 : vector<8x128xf32>
    %c0_23 = arith.constant 0 : index
    %c0_24 = arith.constant 0 : index
    %31 = vector.load %arg2[%c0_23, %c0_24] : memref<1x128xf32, #tpu.memory_space<vmem>>, vector<1x128xf32>
    %32 = vector.broadcast %31 : vector<1x128xf32> to vector<8x128xf32>
    %33 = arith.mulf %0, %32 : vector<8x128xf32>
    %34 = arith.addf %30, %33 : vector<8x128xf32>
    %c0_25 = arith.constant 0 : index
    %c0_26 = arith.constant 0 : index
    %35 = vector.load %arg11[%c0_25, %c0_26] : memref<8x128xf32, #tpu.memory_space<vmem>>, vector<8x128xf32>
    tpu.vector_store %arg11[%c0_25, %c0_26], %34 {strides = array<i32>} : memref<8x128xf32, #tpu.memory_space<vmem>>, vector<8x128xf32>,
    return
  }
  func.func @transform_0(%arg0: i32) -> (i32, i32) {
    %c0_i32 = arith.constant 0 : i32
    %c0_i32_0 = arith.constant 0 : i32
    return %arg0, %c0_i32 : i32, i32
  }
  func.func @transform_1(%arg0: i32) -> (i32, i32) {
    %c0_i32 = arith.constant 0 : i32
    %c0_i32_0 = arith.constant 0 : i32
    %c0_i32_1 = arith.constant 0 : i32
    return %c0_i32, %c0_i32_0 : i32, i32
  }
  func.func @transform_2(%arg0: i32) -> (i32, i32) {
    %c0_i32 = arith.constant 0 : i32
    %c0_i32_0 = arith.constant 0 : i32
    %c0_i32_1 = arith.constant 0 : i32
    return %c0_i32, %c0_i32_0 : i32, i32
  }
  func.func @transform_3(%arg0: i32) -> (i32, i32) {
    %c0_i32 = arith.constant 0 : i32
    %c0_i32_0 = arith.constant 0 : i32
    %c0_i32_1 = arith.constant 0 : i32
    return %c0_i32, %c0_i32_0 : i32, i32
  }
  func.func @transform_4(%arg0: i32) -> (i32, i32) {
    %c0_i32 = arith.constant 0 : i32
    %c0_i32_0 = arith.constant 0 : i32
    %c0_i32_1 = arith.constant 0 : i32
    return %c0_i32, %c0_i32_0 : i32, i32
  }
  func.func @transform_5(%arg0: i32) -> (i32, i32) {
    %c0_i32 = arith.constant 0 : i32
    %c0_i32_0 = arith.constant 0 : i32
    %c0_i32_1 = arith.constant 0 : i32
    return %c0_i32, %c0_i32_0 : i32, i32
  }
  func.func @transform_6(%arg0: i32) -> (i32, i32) {
    %c0_i32 = arith.constant 0 : i32
    %c0_i32_0 = arith.constant 0 : i32
    %c0_i32_1 = arith.constant 0 : i32
    return %c0_i32, %c0_i32_0 : i32, i32
  }
  func.func @transform_7(%arg0: i32) -> (i32, i32) {
    %c0_i32 = arith.constant 0 : i32
    %c0_i32_0 = arith.constant 0 : i32
    %c0_i32_1 = arith.constant 0 : i32
    return %c0_i32, %c0_i32_0 : i32, i32
  }
  func.func @transform_8(%arg0: i32) -> (i32, i32) {
    %c0_i32 = arith.constant 0 : i32
    %c0_i32_0 = arith.constant 0 : i32
    %c0_i32_1 = arith.constant 0 : i32
    return %c0_i32, %c0_i32_0 : i32, i32
  }
  func.func @transform_9(%arg0: i32) -> (i32, i32) {
    %c0_i32 = arith.constant 0 : i32
    %c0_i32_0 = arith.constant 0 : i32
    %c0_i32_1 = arith.constant 0 : i32
    return %c0_i32, %c0_i32_0 : i32, i32
  }
  func.func @transform_10(%arg0: i32) -> (i32, i32) {
    %c0_i32 = arith.constant 0 : i32
    %c0_i32_0 = arith.constant 0 : i32
    return %arg0, %c0_i32 : i32, i32
  }
}

</mosaic_0001>

<bundles_post_ra>
// kernel: decoder_forward.1
= control target key start
LH: loop header
LB: loop body
LE: loop exit
PB: predicated region body
PF: predicated region fallthrough
CT: control target
= control target key end

     0   :  { %15 = vsyncpa [#allocation3], 0  ;;  %s992_s0 = inlined_call_operand.vmem [shape: f32[8,128], index: 0, kind: input, shape index: {}]   ;;  %s993_s1 = inlined_call_operand.vmem [shape: f32[1,128], index: 1, kind: input, shape index: {}]   ;;  %s994_s2 = inlined_call_operand.hbm [shape: bf16[128,128], index: 2, kind: input, shape index: {}]   ;;  %s995_s3 = inlined_call_operand.vmem [shape: f32[1,128], index: 3, kind: input, shape index: {}]   ;;  %s996_s4 = inlined_call_operand.hbm [shape: bf16[128,128], index: 4, kind: input, shape index: {}]   ;;  %s997_s5 = inlined_call_operand.vmem [shape: f32[1,128], index: 5, kind: input, shape index: {}]   ;;  %s998_s6 = inlined_call_operand.hbm [shape: bf16[128,128], index: 6, kind: input, shape index: {}]   ;;  %s999_s7 = inlined_call_operand.vmem [shape: f32[1,128], index: 7, kind: input, shape index: {}]   ;;  %s1000_s8 = inlined_call_operand.hbm [shape: bf16[128,128], index: 8, kind: input, shape index: {}]   ;;  %s1001_s9 = inlined_call_operand.vmem [shape: f32[1,128], index: 9, kind: input, shape index: {}]   ;;  %s1002_s10 = inlined_call_operand.vmem [shape: f32[8,128], index: 10, kind: output, shape index: {}]  }
   0x1   :  { %16 = vsyncpa [#allocation5], 0 }
   0x2   :  { %17 = vsyncpa [#allocation8], 0  ;;  %s839_s13 = smov [#allocation4]   ;;  %s840_s15 = smov [#allocation2]  }
   0x3   :  { %s41_s14 = sshll.u32 %s839_s13, 4  ;;  %s27_s16 = sshll.u32 %s840_s15, 4  ;;  %s42_s14 = int_to_ptr.vmem [resolvable:$true] %s41_s14  ;;  %s28_s16 = int_to_ptr.vmem [resolvable:$true] %s27_s16 }
   0x4   :  { %s761_s17 = scalar_lea.vmem %s42_s14, 1024  ;;  %p766_p1 = scmp.lt.s32.totalorder %s42_s14, %s42_s14 }
   0x5   :  { %p762_p0 = scmp.ne.s32.totalorder %s42_s14, %s761_s17  ;;  %p767_p2 = scmp.lt.s32.totalorder %s761_s17, %s761_s17 }
   0x7   :  { %p768_p3 = por %p767_p2, %p766_p1 }
   0x9   :  { %p769_p4 = pnand %p768_p3, %p762_p0 }
   0xb   :  { %772 = shalt.err (!%p769_p4)
}
   0xc   :  { %s841_s18 = smov 64   ;;  %s842_s19 = smov 4  }
   0xd   :  { %47 = dma.hbm_to_vmem [thread:$0]  %s996_s4, 1024, %s42_s14, [#allocation5], %s841_s18, %s841_s18, %s842_s19  }
   0xe   :  { %s781_s22 = scalar_lea.vmem %s28_s16, 1024  ;;  %p786_p6 = scmp.lt.s32.totalorder %s28_s16, %s28_s16 }
   0xf   :  { %p782_p5 = scmp.ne.s32.totalorder %s28_s16, %s781_s22  ;;  %p787_p7 = scmp.lt.s32.totalorder %s781_s22, %s781_s22 }
  0x11   :  { %p788_p8 = por %p787_p7, %p786_p6 }
  0x13   :  { %p789_p9 = pnand %p788_p8, %p782_p5 }
  0x15   :  { %792 = shalt.err (!%p789_p9)
}
  0x16   :  { %33 = dma.hbm_to_vmem [thread:$0]  %s994_s2, 1024, %s28_s16, [#allocation3], %s841_s18, %s841_s18, %s842_s19  }
  0x17   :  { %s843_s25 = smov [#allocation6]   ;;  %s844_s27 = smov [#allocation7]  }
  0x18   :  { %s55_s26 = sshll.u32 %s843_s25, 4  ;;  %s69_s28 = sshll.u32 %s844_s27, 4  ;;  %s56_s26 = int_to_ptr.vmem [resolvable:$true] %s55_s26  ;;  %s70_s28 = int_to_ptr.vmem [resolvable:$true] %s69_s28 }
  0x19   :  { %s801_s4 = scalar_lea.vmem %s56_s26, 1024  ;;  %p806_p11 = scmp.lt.s32.totalorder %s56_s26, %s56_s26 }
  0x1a   :  { %p802_p10 = scmp.ne.s32.totalorder %s56_s26, %s801_s4  ;;  %p807_p12 = scmp.lt.s32.totalorder %s801_s4, %s801_s4 }
  0x1c   :  { %p808_p13 = por %p807_p12, %p806_p11 }
  0x1e   :  { %p809_p0 = pnand %p808_p13, %p802_p10 }
  0x20   :  { %812 = shalt.err (!%p809_p0)
}
  0x21   :  { %61 = dma.hbm_to_vmem [thread:$0]  %s998_s6, 1024, %s56_s26, [#allocation5], %s841_s18, %s841_s18, %s842_s19  }
  0x22   :  { %s821_s2 = scalar_lea.vmem %s70_s28, 1024  ;;  %p826_p2 = scmp.lt.s32.totalorder %s70_s28, %s70_s28 }
  0x23   :  { %p822_p1 = scmp.ne.s32.totalorder %s70_s28, %s821_s2  ;;  %p827_p3 = scmp.lt.s32.totalorder %s821_s2, %s821_s2 }
  0x25   :  { %p828_p4 = por %p827_p3, %p826_p2 }
  0x27   :  { %p829_p5 = pnand %p828_p4, %p822_p1 }
  0x29   :  { %832 = shalt.err (!%p829_p5)
}
  0x2a   :  { %75 = dma.hbm_to_vmem [thread:$0]  %s1000_s8, 1024, %s70_s28, [#allocation8], %s841_s18, %s841_s18, %s842_s19  }
  0x2b   :  { %833 = dma.done.wait [#allocation3], 1024  }
  0x2c   :  { %834 = vsyncadd [#allocation3], 4294966272 }
  0x2d   :  { %835 = dma.done.wait [#allocation5], 2048  }
  0x2e   :  { %836 = vsyncadd [#allocation5], 4294965248 }
  0x2f   :  { %837 = dma.done.wait [#allocation8], 1024  }
  0x30   :  { %838 = vsyncadd [#allocation8], 4294966272  ;;  %v845_v0 = vmov 0.0   ;;  %vm846_vm0 = vmmov 0   ;;  %v721_v1 = vld [vmem:[#allocation2 + $0x38] sm:$0xff]   ;;  %v722_v2 = vld [vmem:[#allocation2 + $0x30] sm:$0xff]  }
  0x31   :  { %633 = vmatprep.subr.bf16.mxu0 %v845_v0  ;;  %649 = vmatprep.mubr.msk.bf16.mxu0 %vm846_vm0, %v845_v0  ;;  %v723_v3 = vld [vmem:[#allocation2 + $0x28] sm:$0xff]   ;;  %v729_v4 = vld [vmem:[#allocation4 + $0x38] sm:$0xff]   ;;  %v724_v5 = vld [vmem:[#allocation2 + $0x20] sm:$0xff]  }
  0x32   :  { %653 = vmatprep.subr.bf16.mxu1 %v845_v0  ;;  %669 = vmatprep.mubr.msk.bf16.mxu1 %vm846_vm0, %v845_v0  ;;  %v730_v6 = vld [vmem:[#allocation4 + $0x30] sm:$0xff]   ;;  %v725_v7 = vld [vmem:[#allocation2 + $0x18] sm:$0xff]   ;;  %v731_v8 = vld [vmem:[#allocation4 + $0x28] sm:$0xff]  }
  0x33   :  { %634 = vmatpush3.bf16.msra.mxu0 %v721_v1  ;;  %654 = vmatpush3.bf16.msra.mxu1 %v729_v4  ;;  %v726_v9 = vld [vmem:[#allocation2 + $0x10] sm:$0xff]   ;;  %v732_v10 = vld [vmem:[#allocation4 + $0x20] sm:$0xff]   ;;  %v727_v11 = vld [vmem:[#allocation2 + $0x8] sm:$0xff]  }
  0x34   :  { %635 = vmatprep.subr.bf16.mxu0 %v845_v0  ;;  %655 = vmatprep.subr.bf16.mxu1 %v845_v0  ;;  %v733_v12 = vld [vmem:[#allocation4 + $0x18] sm:$0xff]   ;;  %v728_v13 = vld [vmem:[#allocation2] sm:$0xff]   ;;  %v734_v15 = vld [vmem:[#allocation4 + $0x10] sm:$0xff]  }
  0x35   :  { %v945_v14 = vld [vmem:[%s992_s0] sm:$0xff]  ;;  %v735_v17 = vld [vmem:[#allocation4 + $0x8] sm:$0xff]   ;;  %v737_v19 = vld [vmem:[#allocation6 + $0x38] sm:$0xff]  }
  0x36   :  { %v95_v16 = vpack.c.bf16 %v945_v14, %v945_v14  ;;  %v736_v18 = vld [vmem:[#allocation4] sm:$0xff]   ;;  %v738_v20 = vld [vmem:[#allocation6 + $0x30] sm:$0xff]   ;;  %v739_v21 = vld [vmem:[#allocation6 + $0x28] sm:$0xff]  }
  0x37   :  { %636 = vmatpush3.bf16.msra.mxu0 %v722_v2  ;;  %656 = vmatpush3.bf16.msra.mxu1 %v730_v6  ;;  %v740_v22 = vld [vmem:[#allocation6 + $0x20] sm:$0xff]   ;;  %v741_v23 = vld [vmem:[#allocation6 + $0x18] sm:$0xff]   ;;  %v742_v24 = vld [vmem:[#allocation6 + $0x10] sm:$0xff]  }
  0x38   :  { %637 = vmatprep.subr.bf16.mxu0 %v845_v0  ;;  %657 = vmatprep.subr.bf16.mxu1 %v845_v0  ;;  %v560_v25 = vld [vmem:[%s995_s3] ss:$0 sm:$0xff]  ;;  %v743_v33 = vld [vmem:[#allocation6 + $0x8] sm:$0xff]   ;;  %v745_v35 = vld [vmem:[#allocation7 + $0x38] sm:$0xff]  }
  0x39   :  { %v744_v34 = vld [vmem:[#allocation6] sm:$0xff]   ;;  %v746_v36 = vld [vmem:[#allocation7 + $0x30] sm:$0xff]   ;;  %v747_v37 = vld [vmem:[#allocation7 + $0x28] sm:$0xff]  }
  0x3a   :  { %v748_v38 = vld [vmem:[#allocation7 + $0x20] sm:$0xff]   ;;  %v749_v39 = vld [vmem:[#allocation7 + $0x18] sm:$0xff]   ;;  %v750_v40 = vld [vmem:[#allocation7 + $0x10] sm:$0xff]  }
  0x3b   :  { %638 = vmatpush3.bf16.msra.mxu0 %v723_v3  ;;  %658 = vmatpush3.bf16.msra.mxu1 %v731_v8  ;;  %v569_v41 = vld [vmem:[%s997_s5] ss:$0 sm:$0xff]  ;;  %v751_v49 = vld [vmem:[#allocation7 + $0x8] sm:$0xff]  }
  0x3c   :  { %639 = vmatprep.subr.bf16.mxu0 %v845_v0  ;;  %659 = vmatprep.subr.bf16.mxu1 %v845_v0  ;;  %v752_v50 = vld [vmem:[#allocation7] sm:$0xff]  }
  0x3d   :  { %v578_v51 = vld [vmem:[%s999_s7] ss:$0 sm:$0xff] }
  0x3e   :  { %v596_v59 = vld [vmem:[%s993_s1] ss:$0 sm:$0xff] }
  0x3f   :  { %640 = vmatpush3.bf16.msra.mxu0 %v724_v5  ;;  %660 = vmatpush3.bf16.msra.mxu1 %v732_v10  ;;  %v587_v60 = vld [vmem:[%s1001_s9] ss:$0 sm:$0xff]  ;;  %v550_v61 = vmul.f32 %v596_v59, %v945_v14 }
  0x40   :  { %641 = vmatprep.subr.bf16.mxu0 %v845_v0  ;;  %661 = vmatprep.subr.bf16.mxu1 %v845_v0 }
  0x43   :  { %642 = vmatpush3.bf16.msra.mxu0 %v725_v7  ;;  %662 = vmatpush3.bf16.msra.mxu1 %v733_v12 }
  0x44   :  { %643 = vmatprep.subr.bf16.mxu0 %v845_v0  ;;  %663 = vmatprep.subr.bf16.mxu1 %v845_v0 }
  0x47   :  { %644 = vmatpush3.bf16.msra.mxu0 %v726_v9  ;;  %664 = vmatpush3.bf16.msra.mxu1 %v734_v15 }
  0x48   :  { %645 = vmatprep.subr.bf16.mxu0 %v845_v0  ;;  %665 = vmatprep.subr.bf16.mxu1 %v845_v0 }
  0x4b   :  { %646 = vmatpush3.bf16.msra.mxu0 %v727_v11  ;;  %666 = vmatpush3.bf16.msra.mxu1 %v735_v17 }
  0x4c   :  { %647 = vmatprep.subr.bf16.mxu0 %v845_v0  ;;  %667 = vmatprep.subr.bf16.mxu1 %v845_v0 }
  0x4f   :  { %648 = vmatpush3.bf16.msra.mxu0 %v728_v13  ;;  %668 = vmatpush3.bf16.msra.mxu1 %v736_v18 }
  0x50   :  { %673 = vmatprep.subr.bf16.mxu0 %v845_v0  ;;  %693 = vmatprep.subr.bf16.mxu1 %v845_v0 }
  0x52   :  { %650 = vmatmul.mubr.bf16.vlgmr.msra.gmra.mxu0 %v95_v16 }
  0x53   :  { %689 = vmatprep.mubr.msk.bf16.mxu0 %vm846_vm0, %v845_v0  ;;  %674 = vmatpush3.bf16.msra.mxu0 %v737_v19 }
  0x54   :  { %675 = vmatprep.subr.bf16.mxu0 %v845_v0 }
  0x57   :  { %676 = vmatpush3.bf16.msra.mxu0 %v738_v20 }
  0x58   :  { %677 = vmatprep.subr.bf16.mxu0 %v845_v0 }
  0x5b   :  { %678 = vmatpush3.bf16.msra.mxu0 %v739_v21 }
  0x5c   :  { %679 = vmatprep.subr.bf16.mxu0 %v845_v0 }
  0x5f   :  { %680 = vmatpush3.bf16.msra.mxu0 %v740_v22 }
  0x60   :  { %681 = vmatprep.subr.bf16.mxu0 %v845_v0 }
  0x63   :  { %682 = vmatpush3.bf16.msra.mxu0 %v741_v23 }
  0x64   :  { %683 = vmatprep.subr.bf16.mxu0 %v845_v0 }
  0x67   :  { %684 = vmatpush3.bf16.msra.mxu0 %v742_v24 }
  0x68   :  { %685 = vmatprep.subr.bf16.mxu0 %v845_v0 }
  0x6b   :  { %686 = vmatpush3.bf16.msra.mxu0 %v743_v33 }
  0x6c   :  { %687 = vmatprep.subr.bf16.mxu0 %v845_v0 }
  0x6f   :  { %688 = vmatpush3.bf16.msra.mxu0 %v744_v34 }
 0x112   :  { %v200_v26 = vpop.f32.mrf.mxu0 }
 0x113   :  { %v201_v27 = vadd.f32 %v560_v25, %v200_v26 }
 0x114   :  { %v651_v28 = vpop.f32.mrf.mxu0 }
 0x115   :  { %v206_v29 = vmax.f32 %v201_v27, 0.0 }
 0x116   :  { %v203_v30 = vpop.f32.mrf.mxu0 }
 0x117   :  { %v207_v31 = vpack.c.bf16 %v206_v29, %v206_v29 }
 0x118   :  { %v652_v32 = vpop.f32.mrf.mxu0 }
 0x119   :  { %670 = vmatmul.mubr.bf16.vlgmr.msra.gmra.mxu1 %v207_v31 }
 0x11a   :  { %709 = vmatprep.mubr.msk.bf16.mxu1 %vm846_vm0, %v845_v0  ;;  %694 = vmatpush3.bf16.msra.mxu1 %v745_v35 }
 0x11b   :  { %695 = vmatprep.subr.bf16.mxu1 %v845_v0 }
 0x11e   :  { %696 = vmatpush3.bf16.msra.mxu1 %v746_v36 }
 0x11f   :  { %697 = vmatprep.subr.bf16.mxu1 %v845_v0 }
 0x122   :  { %698 = vmatpush3.bf16.msra.mxu1 %v747_v37 }
 0x123   :  { %699 = vmatprep.subr.bf16.mxu1 %v845_v0 }
 0x126   :  { %700 = vmatpush3.bf16.msra.mxu1 %v748_v38 }
 0x127   :  { %701 = vmatprep.subr.bf16.mxu1 %v845_v0 }
 0x12a   :  { %702 = vmatpush3.bf16.msra.mxu1 %v749_v39 }
 0x12b   :  { %703 = vmatprep.subr.bf16.mxu1 %v845_v0 }
 0x12e   :  { %704 = vmatpush3.bf16.msra.mxu1 %v750_v40 }
 0x12f   :  { %705 = vmatprep.subr.bf16.mxu1 %v845_v0 }
 0x132   :  { %706 = vmatpush3.bf16.msra.mxu1 %v751_v49 }
 0x133   :  { %707 = vmatprep.subr.bf16.mxu1 %v845_v0 }
 0x136   :  { %708 = vmatpush3.bf16.msra.mxu1 %v752_v50 }
 0x1d9   :  { %v312_v42 = vpop.f32.mrf.mxu1 }
 0x1da   :  { %v313_v43 = vadd.f32 %v569_v41, %v312_v42 }
 0x1db   :  { %v671_v44 = vpop.f32.mrf.mxu1 }
 0x1dc   :  { %v318_v45 = vmax.f32 %v313_v43, 0.0 }
 0x1dd   :  { %v315_v46 = vpop.f32.mrf.mxu1 }
 0x1de   :  { %v319_v47 = vpack.c.bf16 %v318_v45, %v318_v45 }
 0x1df   :  { %v672_v48 = vpop.f32.mrf.mxu1 }
 0x1e0   :  { %690 = vmatmul.mubr.bf16.vlgmr.msra.gmra.mxu0 %v319_v47 }
 0x2a0   :  { %v424_v52 = vpop.f32.mrf.mxu0 }
 0x2a1   :  { %v425_v53 = vadd.f32 %v578_v51, %v424_v52 }
 0x2a2   :  { %v691_v54 = vpop.f32.mrf.mxu0 }
 0x2a3   :  { %v430_v55 = vmax.f32 %v425_v53, 0.0 }
 0x2a4   :  { %v427_v56 = vpop.f32.mrf.mxu0 }
 0x2a5   :  { %v431_v57 = vpack.c.bf16 %v430_v55, %v430_v55 }
 0x2a6   :  { %v692_v58 = vpop.f32.mrf.mxu0 }
 0x2a7   :  { %710 = vmatmul.mubr.bf16.vlgmr.msra.gmra.mxu1 %v431_v57 }
 0x367   :  { %v537_v62 = vpop.f32.mrf.mxu1 }
 0x368   :  { %v538_v63 = vadd.f32 %v587_v60, %v537_v62 }
 0x369   :  { %v711_v0 = vpop.f32.mrf.mxu1 }
 0x36a   :  { %v551_v1 = vadd.f32 %v550_v61, %v538_v63 }
 0x36b   :  { %v540_v2 = vpop.f32.mrf.mxu1 }
 0x36c   :  { %552 = vst [vmem:[%s1002_s10] sm:$0xff] %v551_v1 }
 0x36d   :  { %v712_v3 = vpop.f32.mrf.mxu1 }
 0x36e   :  { %557 = vsyncpa [#allocation3], 1 }
 0x36f   :  { %558 = vsyncpa [#allocation5], 1 }
 0x370   :  { %559 = vsyncpa [#allocation8], 1 }

</bundles_post_ra>
